<compile_context>
chip_gen: v7x
topology: tpu7x:2x2x1
jax: 0.10.0
libtpu: 0.0.40
codegen_flags: <defaults>
</compile_context>

<pallas_src>
import jax
import jax.numpy as jnp
from jax import lax
from jax.experimental import pallas as pl
from jax.experimental.pallas import tpu as pltpu

# ---- config (mirrors the PyTorch `config` object) ----
VOCAB   = 16   # input_size (vocabulary)
NHID    = 32   # config.nhid
EMSIZE  = 32   # config.emsize (== NHID)
IMGSIZE = 16   # config.imgsize
NLAYERS = 2    # config.nlayers (also the forward-loop count `self.n_layers`)
BATCH   = 2
# config.model == 'GRU'; config.dropout treated as identity (eval mode)
# TODO(synk): training-mode dropout (stochastic masks) intentionally omitted.

OUT_LANES = 128
OUT_ROWS  = 8
assert VOCAB <= OUT_LANES and NHID <= OUT_LANES
assert 1 + NLAYERS * BATCH <= OUT_ROWS


def decoder_kernel(tok_ref,                       # SMEM (R, B) int32  (scalar prefetch)
                   img_ref, h0_ref,               # (B, IMG), (NLAYERS, B, H)
                   w_in_ref, b_in_ref,            # (V+IMG, H), (1, H)   [0.5 folded in]
                   w_g_ref, b_g_ref,              # (NLAYERS, 2H, 3H), (NLAYERS, 1, 3H)
                   w_hn_ref, b_hn_ref,            # (NLAYERS, H, H),   (NLAYERS, 1, H)
                   w_out_ref, b_out_ref,          # (H, V), (1, V)
                   out_ref):                      # (OUT_ROWS, OUT_LANES) packed
    B, H, V = BATCH, NHID, VOCAB
    f32 = jnp.float32
    r_id = pl.program_id(0)

    # --- fused input stage: [onehot(tokens) | img] @ [0.5*emb ; 0.5*wlin] + 0.5*blin ---
    lane = lax.broadcasted_iota(jnp.int32, (B, V), 1)
    row = lax.broadcasted_iota(jnp.int32, (B, V), 0)
    tok_b = jnp.zeros((B, V), jnp.int32)
    for b in range(B):                                   # B is tiny; scalar SMEM reads
        tok_b = jnp.where(row == b, tok_ref[r_id, b], tok_b)
    onehot = (lane == tok_b).astype(f32)                 # (B, V)
    xin = jnp.concatenate([onehot, img_ref[...]], axis=1)                 # (B, V+IMG)
    x = jnp.dot(xin, w_in_ref[...], preferred_element_type=f32) + b_in_ref[...]  # (B, H)

    # hidden state lives in values (one read per layer, written once at the end)
    h_list = [h0_ref[l] for l in range(NLAYERS)]

    for _ in range(NLAYERS):                 # forward's `for i in range(self.n_layers)`
        x = jnp.maximum(x, 0.0)              # F.relu
        for l in range(NLAYERS):             # one step of the stacked GRU (seq_len == 1)
            h_prev = h_list[l]
            cat = jnp.concatenate([x, h_prev], axis=1)                    # (B, 2H)
            g = jnp.dot(cat, w_g_ref[l], preferred_element_type=f32) + b_g_ref[l]      # (B, 3H)
            ghn = jnp.dot(h_prev, w_hn_ref[l], preferred_element_type=f32) + b_hn_ref[l]  # (B, H)
            rz = jax.nn.sigmoid(g[:, 0:2 * H])                            # offset-0 slice
            r = rz[:, 0:H]
            z = rz[:, H:2 * H]
            n = jnp.tanh(g[:, 2 * H:3 * H] + r * ghn)
            h_new = (1.0 - z) * n + z * h_prev
            h_list[l] = h_new
            x = h_new
        # dropout -> identity (eval)

    # output[0] (first batch row), out-linear + log-softmax (dim=1)
    row0 = x[0:1, :]                                                      # (1, H)
    logits = jnp.dot(row0, w_out_ref[...], preferred_element_type=f32) + b_out_ref[...]  # (1, V)
    m = jnp.max(logits, axis=1, keepdims=True)
    lse = jnp.log(jnp.sum(jnp.exp(logits - m), axis=1, keepdims=True)) + m
    logp = logits - lse                                                   # (1, V)

    # --- pack everything into one lane-dense (8, 128) block; single unmasked store ---
    logp_row = jnp.concatenate([logp, jnp.zeros((1, OUT_LANES - V), f32)], axis=1)
    h_stack = jnp.concatenate(h_list, axis=0)                             # (NLAYERS*B, H)
    h_rows = jnp.concatenate(
        [h_stack, jnp.zeros((NLAYERS * B, OUT_LANES - H), f32)], axis=1)
    pieces = [logp_row, h_rows]
    pad_rows = OUT_ROWS - 1 - NLAYERS * B
    if pad_rows:
        pieces.append(jnp.zeros((pad_rows, OUT_LANES), f32))
    out_ref[...] = jnp.concatenate(pieces, axis=0)


def decoder_forward_batched(tokens, img_features, hidden, kparams):
    """R independent decode steps in one pallas_call.

    tokens: (R, B) int32; img_features: (R, B, IMGSIZE); hidden: (R, NLAYERS, B, NHID).
    Returns logp (R, 1, VOCAB) and new hidden (R, NLAYERS, B, NHID).
    """
    R = tokens.shape[0]
    grid_spec = pltpu.PrefetchScalarGridSpec(
        num_scalar_prefetch=1,
        grid=(R,),
        in_specs=[
            pl.BlockSpec((None, BATCH, IMGSIZE), lambda r, tok: (r, 0, 0)),
            pl.BlockSpec((None, NLAYERS, BATCH, NHID), lambda r, tok: (r, 0, 0, 0)),
            pl.BlockSpec((VOCAB + IMGSIZE, NHID), lambda r, tok: (0, 0)),
            pl.BlockSpec((1, NHID), lambda r, tok: (0, 0)),
            pl.BlockSpec((NLAYERS, 2 * NHID, 3 * NHID), lambda r, tok: (0, 0, 0)),
            pl.BlockSpec((NLAYERS, 1, 3 * NHID), lambda r, tok: (0, 0, 0)),
            pl.BlockSpec((NLAYERS, NHID, NHID), lambda r, tok: (0, 0, 0)),
            pl.BlockSpec((NLAYERS, 1, NHID), lambda r, tok: (0, 0, 0)),
            pl.BlockSpec((NHID, VOCAB), lambda r, tok: (0, 0)),
            pl.BlockSpec((1, VOCAB), lambda r, tok: (0, 0)),
        ],
        out_specs=pl.BlockSpec((None, OUT_ROWS, OUT_LANES), lambda r, tok: (r, 0, 0)),
    )
    packed = pl.pallas_call(
        decoder_kernel,
        out_shape=jax.ShapeDtypeStruct((R, OUT_ROWS, OUT_LANES), jnp.float32),
        grid_spec=grid_spec,
        compiler_params=pltpu.CompilerParams(dimension_semantics=("parallel",)),
    )(
        tokens.astype(jnp.int32),
        img_features.astype(jnp.float32),
        hidden.astype(jnp.float32),
        kparams["w_in"], kparams["b_in"],
        kparams["w_g"], kparams["b_g"],
        kparams["w_hn"], kparams["b_hn"],
        kparams["w_out"], kparams["b_out"],
    )
    logp = packed[:, 0:1, :VOCAB]                                          # (R, 1, V)
    new_hidden = packed[:, 1:1 + NLAYERS * BATCH, :NHID].reshape(R, NLAYERS, BATCH, NHID)
    return logp, new_hidden


def decoder_forward(tokens, img_features, hidden, kparams):
    """Single decode step matching the PyTorch forward signature."""
    logp, h = decoder_forward_batched(tokens[None], img_features[None], hidden[None], kparams)
    return logp[0], h[0]


def prepare_params(kernel_key_params):
    """Host-side, one-time re-layout of GRU-style params into the fused kernel layout."""
    p = kernel_key_params
    H = NHID
    # fused input stage; fold the /2 of (embedded + img_emb)/2 into the weights
    w_in = 0.5 * jnp.concatenate([p["emb"], p["wlin"]], axis=0)            # (V+IMG, H)
    b_in = 0.5 * p["blin"]                                                 # (1, H)
    wih, whh = p["wih"], p["whh"]                                          # (L, H, 3H)
    bih, bhh = p["bih"], p["bhh"]                                          # (L, 1, 3H)
    # [x | h] @ w_g -> [r | z | n_x] pre-activations; h contributes 0 to the n_x column
    whh_rz0 = jnp.concatenate(
        [whh[:, :, :2 * H], jnp.zeros((NLAYERS, H, H), jnp.float32)], axis=2)   # (L, H, 3H)
    w_g = jnp.concatenate([wih, whh_rz0], axis=1)                          # (L, 2H, 3H)
    b_g = jnp.concatenate(
        [bih[:, :, :2 * H] + bhh[:, :, :2 * H], bih[:, :, 2 * H:]], axis=2)     # (L, 1, 3H)
    w_hn = whh[:, :, 2 * H:]                                               # (L, H, H)
    b_hn = bhh[:, :, 2 * H:]                                               # (L, 1, H)
    return {
        "w_in": w_in, "b_in": b_in,
        "w_g": w_g, "b_g": b_g, "w_hn": w_hn, "b_hn": b_hn,
        "w_out": p["wout"], "b_out": p["bout"],
    }


def decoder_reference(tokens, img_features, hidden, params):
    """Pure-JAX reference mirroring the PyTorch forward (eval mode), original param layout."""
    embedded = params["emb"][tokens]                            # (B, H)
    img_emb = img_features @ params["wlin"] + params["blin"]    # (B, H)
    x = (embedded + img_emb) * 0.5
    h = hidden
    H = NHID
    for _ in range(NLAYERS):
        x = jnp.maximum(x, 0.0)
        h_list = []
        inp = x
        for l in range(NLAYERS):
            h_prev = h[l]
            gi = inp @ params["wih"][l] + params["bih"][l]
            gh = h_prev @ params["whh"][l] + params["bhh"][l]
            r = jax.nn.sigmoid(gi[:, 0:H] + gh[:, 0:H])
            z = jax.nn.sigmoid(gi[:, H:2 * H] + gh[:, H:2 * H])
            n = jnp.tanh(gi[:, 2 * H:3 * H] + r * gh[:, 2 * H:3 * H])
            h_new = (1.0 - z) * n + z * h_prev
            h_list.append(h_new)
            inp = h_new
        h = jnp.stack(h_list, axis=0)
        x = inp
    logits = x[0:1, :] @ params["wout"] + params["bout"]
    logp = logits - jax.nn.logsumexp(logits, axis=1, keepdims=True)
    return logp, h


def init_params(key):
    ks = jax.random.split(key, 10)
    s = 0.1
    u = lambda k, shape: jax.random.uniform(k, shape, jnp.float32, -s, s)
    return {
        "emb":  u(ks[0], (VOCAB, NHID)),
        "wlin": u(ks[1], (IMGSIZE, NHID)),             # Linear(imgsize, nhid), pre-transposed
        "blin": u(ks[2], (1, NHID)),
        "wih":  u(ks[3], (NLAYERS, NHID, 3 * NHID)),   # GRU W_ih^T per layer, cols [r|z|n]
        "whh":  u(ks[4], (NLAYERS, NHID, 3 * NHID)),   # GRU W_hh^T per layer
        "bih":  u(ks[5], (NLAYERS, 1, 3 * NHID)),
        "bhh":  u(ks[6], (NLAYERS, 1, 3 * NHID)),
        "wout": u(ks[7], (NHID, VOCAB)),               # Linear(nhid, input_size), pre-transposed
        "bout": u(ks[8], (1, VOCAB)),
    }


if __name__ == "__main__":
    key = jax.random.PRNGKey(0)
    kp, kt, ki = jax.random.split(key, 3)

    params = init_params(kp)
    kparams = prepare_params(params)

    # ---- single request (exact PyTorch forward signature) ----
    tokens = jax.random.randint(kt, (BATCH,), 0, VOCAB, dtype=jnp.int32)
    img_features = jax.random.normal(ki, (BATCH, IMGSIZE), dtype=jnp.float32)
    hidden = jnp.zeros((NLAYERS, BATCH, NHID), dtype=jnp.float32)          # init_weights()

    logp, new_hidden = decoder_forward(tokens, img_features, hidden, kparams)
    logp = jax.block_until_ready(logp)
    new_hidden = jax.block_until_ready(new_hidden)

    logp_ref, hidden_ref = decoder_reference(tokens, img_features, hidden, params)
    assert logp.shape == (1, VOCAB)
    assert new_hidden.shape == (NLAYERS, BATCH, NHID)
    assert jnp.allclose(logp, logp_ref, atol=2e-3, rtol=2e-3)
    assert jnp.allclose(new_hidden, hidden_ref, atol=2e-3, rtol=2e-3)

    # ---- many independent requests amortized through one pallas_call (parallel grid) ----
    R = 8
    kt2, ki2, kh2 = jax.random.split(jax.random.PRNGKey(1), 3)
    tokens_b = jax.random.randint(kt2, (R, BATCH), 0, VOCAB, dtype=jnp.int32)
    img_b = jax.random.normal(ki2, (R, BATCH, IMGSIZE), dtype=jnp.float32)
    hidden_b = 0.1 * jax.random.normal(kh2, (R, NLAYERS, BATCH, NHID), dtype=jnp.float32)

    logp_b, hid_b = decoder_forward_batched(tokens_b, img_b, hidden_b, kparams)
    logp_b = jax.block_until_ready(logp_b)
    hid_b = jax.block_until_ready(hid_b)

    ref_logp_b, ref_hid_b = jax.vmap(decoder_reference, in_axes=(0, 0, 0, None))(
        tokens_b, img_b, hidden_b, params)
    assert jnp.allclose(logp_b, ref_logp_b, atol=2e-3, rtol=2e-3)
    assert jnp.allclose(hid_b, ref_hid_b, atol=2e-3, rtol=2e-3)

    print("KERNEL_OK")
</pallas_src>

<mosaic_0001>
module attributes {stable_mosaic.version = 11 : i64} {
  func.func @decoder_kernel(%arg0: i32, %arg1: memref<1x2xi32, #tpu.memory_space<smem>>, %arg2: memref<1x2x16xf32, #tpu.memory_space<vmem>>, %arg3: memref<1x2x2x32xf32, #tpu.memory_space<vmem>>, %arg4: memref<32x32xf32, #tpu.memory_space<vmem>>, %arg5: memref<1x32xf32, #tpu.memory_space<vmem>>, %arg6: memref<2x64x96xf32, #tpu.memory_space<vmem>>, %arg7: memref<2x1x96xf32, #tpu.memory_space<vmem>>, %arg8: memref<2x32x32xf32, #tpu.memory_space<vmem>>, %arg9: memref<2x1x32xf32, #tpu.memory_space<vmem>>, %arg10: memref<32x16xf32, #tpu.memory_space<vmem>>, %arg11: memref<1x16xf32, #tpu.memory_space<vmem>>, %arg12: memref<1x8x128xf32, #tpu.memory_space<vmem>>) attributes {dimension_semantics = [#tpu.dimension_semantics<parallel>], iteration_bounds = array<i64: 1>, scalar_prefetch = 1 : i64, scratch_operands = 0 : i64, tpu.core_type = #tpu.core_type<tc>, window_params = [{transform_indices = @transform_0, window_bounds = array<i64: 1, 2, 16>}, {transform_indices = @transform_1, window_bounds = array<i64: 1, 2, 2, 32>}, {pipeline_mode = #tpu.pipeline_mode<synchronous>, transform_indices = @transform_2, window_bounds = array<i64: 32, 32>}, {pipeline_mode = #tpu.pipeline_mode<synchronous>, transform_indices = @transform_3, window_bounds = array<i64: 1, 32>}, {pipeline_mode = #tpu.pipeline_mode<synchronous>, transform_indices = @transform_4, window_bounds = array<i64: 2, 64, 96>}, {pipeline_mode = #tpu.pipeline_mode<synchronous>, transform_indices = @transform_5, window_bounds = array<i64: 2, 1, 96>}, {pipeline_mode = #tpu.pipeline_mode<synchronous>, transform_indices = @transform_6, window_bounds = array<i64: 2, 32, 32>}, {pipeline_mode = #tpu.pipeline_mode<synchronous>, transform_indices = @transform_7, window_bounds = array<i64: 2, 1, 32>}, {pipeline_mode = #tpu.pipeline_mode<synchronous>, transform_indices = @transform_8, window_bounds = array<i64: 32, 16>}, {pipeline_mode = #tpu.pipeline_mode<synchronous>, transform_indices = @transform_9, window_bounds = array<i64: 1, 16>}, {transform_indices = @transform_10, window_bounds = array<i64: 1, 8, 128>}]} {
    %0 = tpu.iota {dimensions = array<i32: 1>} : vector<2x16xi32>
    %1 = tpu.iota {dimensions = array<i32: 0>} : vector<2x16xi32>
    %c0_i32 = arith.constant 0 : i32
    %2 = vector.broadcast %c0_i32 : i32 to vector<2x16xi32>
    %c0_i32_0 = arith.constant 0 : i32
    %3 = vector.broadcast %c0_i32_0 : i32 to vector<2x16xi32>
    %4 = arith.cmpi eq, %1, %3 : vector<2x16xi32>
    %5 = arith.index_cast %arg0 : i32 to index
    %c0 = arith.constant 0 : index
    %6 = memref.load %arg1[%5, %c0] : memref<1x2xi32, #tpu.memory_space<smem>>
    %7 = vector.broadcast %6 : i32 to vector<2x16xi32>
    %8 = arith.select %4, %7, %2 : vector<2x16xi1>, vector<2x16xi32>
    %c1_i32 = arith.constant 1 : i32
    %9 = vector.broadcast %c1_i32 : i32 to vector<2x16xi32>
    %10 = arith.cmpi eq, %1, %9 : vector<2x16xi32>
    %11 = arith.index_cast %arg0 : i32 to index
    %c1 = arith.constant 1 : index
    %12 = memref.load %arg1[%11, %c1] : memref<1x2xi32, #tpu.memory_space<smem>>
    %13 = vector.broadcast %12 : i32 to vector<2x16xi32>
    %14 = arith.select %10, %13, %8 : vector<2x16xi1>, vector<2x16xi32>
    %15 = arith.cmpi eq, %0, %14 : vector<2x16xi32>
    %16 = arith.extui %15 : vector<2x16xi1> to vector<2x16xi32>
    %17 = arith.sitofp %16 : vector<2x16xi32> to vector<2x16xf32>
    %c0_1 = arith.constant 0 : index
    %c0_2 = arith.constant 0 : index
    %c0_3 = arith.constant 0 : index
    %18 = vector.load %arg2[%c0_1, %c0_2, %c0_3] : memref<1x2x16xf32, #tpu.memory_space<vmem>>, vector<1x2x16xf32>
    %19 = vector.shape_cast %18 : vector<1x2x16xf32> to vector<2x16xf32>
    %20 = tpu.concatenate %17, %19 in 1 : vector<2x16xf32>, vector<2x16xf32> -> vector<2x32xf32>
    %c0_4 = arith.constant 0 : index
    %c0_5 = arith.constant 0 : index
    %21 = vector.load %arg4[%c0_4, %c0_5] : memref<32x32xf32, #tpu.memory_space<vmem>>, vector<32x32xf32>
    %cst = arith.constant dense<0.000000e+00> : vector<2x32xf32>
    %22 = tpu.matmul %20, %21, %cst {dimension_numbers = #tpu.dot_dimension_numbers<[1], [0], [0], [1], [0, 0, 1, 1], [], []>} : vector<2x32xf32>, vector<32x32xf32>, vector<2x32xf32> -> vector<2x32xf32>
    %c0_6 = arith.constant 0 : index
    %c0_7 = arith.constant 0 : index
    %23 = vector.load %arg5[%c0_6, %c0_7] : memref<1x32xf32, #tpu.memory_space<vmem>>, vector<1x32xf32>
    %24 = vector.broadcast %23 : vector<1x32xf32> to vector<2x32xf32>
    %25 = arith.addf %22, %24 : vector<2x32xf32>
    %c0_8 = arith.constant 0 : index
    %c0_9 = arith.constant 0 : index
    %c0_10 = arith.constant 0 : index
    %c0_11 = arith.constant 0 : index
    %26 = vector.load %arg3[%c0_8, %c0_9, %c0_10, %c0_11] : memref<1x2x2x32xf32, #tpu.memory_space<vmem>>, vector<1x1x2x32xf32>
    %27 = vector.shape_cast %26 : vector<1x1x2x32xf32> to vector<2x32xf32>
    %c0_12 = arith.constant 0 : index
    %c1_13 = arith.constant 1 : index
    %c0_14 = arith.constant 0 : index
    %c0_15 = arith.constant 0 : index
    %28 = vector.load %arg3[%c0_12, %c1_13, %c0_14, %c0_15] : memref<1x2x2x32xf32, #tpu.memory_space<vmem>>, vector<1x1x2x32xf32>
    %29 = vector.shape_cast %28 : vector<1x1x2x32xf32> to vector<2x32xf32>
    %cst_16 = arith.constant 0.000000e+00 : f32
    %30 = vector.broadcast %cst_16 : f32 to vector<2x32xf32>
    %31 = arith.maximumf %25, %30 : vector<2x32xf32>
    %32 = tpu.concatenate %31, %27 in 1 : vector<2x32xf32>, vector<2x32xf32> -> vector<2x64xf32>
    %c0_17 = arith.constant 0 : index
    %c0_18 = arith.constant 0 : index
    %c0_19 = arith.constant 0 : index
    %33 = vector.load %arg6[%c0_17, %c0_18, %c0_19] : memref<2x64x96xf32, #tpu.memory_space<vmem>>, vector<1x64x96xf32>
    %34 = vector.shape_cast %33 : vector<1x64x96xf32> to vector<64x96xf32>
    %cst_20 = arith.constant dense<0.000000e+00> : vector<2x96xf32>
    %35 = tpu.matmul %32, %34, %cst_20 {dimension_numbers = #tpu.dot_dimension_numbers<[1], [0], [0], [1], [0, 0, 1, 1], [], []>} : vector<2x64xf32>, vector<64x96xf32>, vector<2x96xf32> -> vector<2x96xf32>
    %c0_21 = arith.constant 0 : index
    %c0_22 = arith.constant 0 : index
    %c0_23 = arith.constant 0 : index
    %36 = vector.load %arg7[%c0_21, %c0_22, %c0_23] : memref<2x1x96xf32, #tpu.memory_space<vmem>>, vector<1x1x96xf32>
    %37 = vector.shape_cast %36 : vector<1x1x96xf32> to vector<1x96xf32>
    %38 = vector.broadcast %37 : vector<1x96xf32> to vector<2x96xf32>
    %39 = arith.addf %35, %38 : vector<2x96xf32>
    %c0_24 = arith.constant 0 : index
    %c0_25 = arith.constant 0 : index
    %c0_26 = arith.constant 0 : index
    %40 = vector.load %arg8[%c0_24, %c0_25, %c0_26] : memref<2x32x32xf32, #tpu.memory_space<vmem>>, vector<1x32x32xf32>
    %41 = vector.shape_cast %40 : vector<1x32x32xf32> to vector<32x32xf32>
    %cst_27 = arith.constant dense<0.000000e+00> : vector<2x32xf32>
    %42 = tpu.matmul %27, %41, %cst_27 {dimension_numbers = #tpu.dot_dimension_numbers<[1], [0], [0], [1], [0, 0, 1, 1], [], []>} : vector<2x32xf32>, vector<32x32xf32>, vector<2x32xf32> -> vector<2x32xf32>
    %c0_28 = arith.constant 0 : index
    %c0_29 = arith.constant 0 : index
    %c0_30 = arith.constant 0 : index
    %43 = vector.load %arg9[%c0_28, %c0_29, %c0_30] : memref<2x1x32xf32, #tpu.memory_space<vmem>>, vector<1x1x32xf32>
    %44 = vector.shape_cast %43 : vector<1x1x32xf32> to vector<1x32xf32>
    %45 = vector.broadcast %44 : vector<1x32xf32> to vector<2x32xf32>
    %46 = arith.addf %42, %45 : vector<2x32xf32>
    %47 = vector.extract_strided_slice %39 {offsets = [0, 0], sizes = [2, 64], strides = [1, 1]} : vector<2x96xf32> to vector<2x64xf32>
    %48 = arith.negf %47 : vector<2x64xf32>
    %49 = math.exp %48 : vector<2x64xf32>
    %cst_31 = arith.constant 1.000000e+00 : f32
    %50 = vector.broadcast %cst_31 : f32 to vector<2x64xf32>
    %51 = arith.addf %50, %49 : vector<2x64xf32>
    %52 = arith.divf %50, %51 : vector<2x64xf32>
    %53 = vector.extract_strided_slice %52 {offsets = [0, 0], sizes = [2, 32], strides = [1, 1]} : vector<2x64xf32> to vector<2x32xf32>
    %54 = vector.extract_strided_slice %52 {offsets = [0, 32], sizes = [2, 32], strides = [1, 1]} : vector<2x64xf32> to vector<2x32xf32>
    %55 = vector.extract_strided_slice %39 {offsets = [0, 64], sizes = [2, 32], strides = [1, 1]} : vector<2x96xf32> to vector<2x32xf32>
    %56 = arith.mulf %53, %46 : vector<2x32xf32>
    %57 = arith.addf %55, %56 : vector<2x32xf32>
    %58 = math.tanh %57 : vector<2x32xf32>
    %cst_32 = arith.constant 1.000000e+00 : f32
    %59 = vector.broadcast %cst_32 : f32 to vector<2x32xf32>
    %60 = arith.subf %59, %54 : vector<2x32xf32>
    %61 = arith.mulf %60, %58 : vector<2x32xf32>
    %62 = arith.mulf %54, %27 : vector<2x32xf32>
    %63 = arith.addf %61, %62 : vector<2x32xf32>
    %64 = tpu.concatenate %63, %29 in 1 : vector<2x32xf32>, vector<2x32xf32> -> vector<2x64xf32>
    %c1_33 = arith.constant 1 : index
    %c0_34 = arith.constant 0 : index
    %c0_35 = arith.constant 0 : index
    %65 = vector.load %arg6[%c1_33, %c0_34, %c0_35] : memref<2x64x96xf32, #tpu.memory_space<vmem>>, vector<1x64x96xf32>
    %66 = vector.shape_cast %65 : vector<1x64x96xf32> to vector<64x96xf32>
    %cst_36 = arith.constant dense<0.000000e+00> : vector<2x96xf32>
    %67 = tpu.matmul %64, %66, %cst_36 {dimension_numbers = #tpu.dot_dimension_numbers<[1], [0], [0], [1], [0, 0, 1, 1], [], []>} : vector<2x64xf32>, vector<64x96xf32>, vector<2x96xf32> -> vector<2x96xf32>
    %c1_37 = arith.constant 1 : index
    %c0_38 = arith.constant 0 : index
    %c0_39 = arith.constant 0 : index
    %68 = vector.load %arg7[%c1_37, %c0_38, %c0_39] : memref<2x1x96xf32, #tpu.memory_space<vmem>>, vector<1x1x96xf32>
    %69 = vector.shape_cast %68 : vector<1x1x96xf32> to vector<1x96xf32>
    %70 = vector.broadcast %69 : vector<1x96xf32> to vector<2x96xf32>
    %71 = arith.addf %67, %70 : vector<2x96xf32>
    %c1_40 = arith.constant 1 : index
    %c0_41 = arith.constant 0 : index
    %c0_42 = arith.constant 0 : index
    %72 = vector.load %arg8[%c1_40, %c0_41, %c0_42] : memref<2x32x32xf32, #tpu.memory_space<vmem>>, vector<1x32x32xf32>
    %73 = vector.shape_cast %72 : vector<1x32x32xf32> to vector<32x32xf32>
    %cst_43 = arith.constant dense<0.000000e+00> : vector<2x32xf32>
    %74 = tpu.matmul %29, %73, %cst_43 {dimension_numbers = #tpu.dot_dimension_numbers<[1], [0], [0], [1], [0, 0, 1, 1], [], []>} : vector<2x32xf32>, vector<32x32xf32>, vector<2x32xf32> -> vector<2x32xf32>
    %c1_44 = arith.constant 1 : index
    %c0_45 = arith.constant 0 : index
    %c0_46 = arith.constant 0 : index
    %75 = vector.load %arg9[%c1_44, %c0_45, %c0_46] : memref<2x1x32xf32, #tpu.memory_space<vmem>>, vector<1x1x32xf32>
    %76 = vector.shape_cast %75 : vector<1x1x32xf32> to vector<1x32xf32>
    %77 = vector.broadcast %76 : vector<1x32xf32> to vector<2x32xf32>
    %78 = arith.addf %74, %77 : vector<2x32xf32>
    %79 = vector.extract_strided_slice %71 {offsets = [0, 0], sizes = [2, 64], strides = [1, 1]} : vector<2x96xf32> to vector<2x64xf32>
    %80 = arith.negf %79 : vector<2x64xf32>
    %81 = math.exp %80 : vector<2x64xf32>
    %cst_47 = arith.constant 1.000000e+00 : f32
    %82 = vector.broadcast %cst_47 : f32 to vector<2x64xf32>
    %83 = arith.addf %82, %81 : vector<2x64xf32>
    %84 = arith.divf %82, %83 : vector<2x64xf32>
    %85 = vector.extract_strided_slice %84 {offsets = [0, 0], sizes = [2, 32], strides = [1, 1]} : vector<2x64xf32> to vector<2x32xf32>
    %86 = vector.extract_strided_slice %84 {offsets = [0, 32], sizes = [2, 32], strides = [1, 1]} : vector<2x64xf32> to vector<2x32xf32>
    %87 = vector.extract_strided_slice %71 {offsets = [0, 64], sizes = [2, 32], strides = [1, 1]} : vector<2x96xf32> to vector<2x32xf32>
    %88 = arith.mulf %85, %78 : vector<2x32xf32>
    %89 = arith.addf %87, %88 : vector<2x32xf32>
    %90 = math.tanh %89 : vector<2x32xf32>
    %cst_48 = arith.constant 1.000000e+00 : f32
    %91 = vector.broadcast %cst_48 : f32 to vector<2x32xf32>
    %92 = arith.subf %91, %86 : vector<2x32xf32>
    %93 = arith.mulf %92, %90 : vector<2x32xf32>
    %94 = arith.mulf %86, %29 : vector<2x32xf32>
    %95 = arith.addf %93, %94 : vector<2x32xf32>
    %cst_49 = arith.constant 0.000000e+00 : f32
    %96 = vector.broadcast %cst_49 : f32 to vector<2x32xf32>
    %97 = arith.maximumf %95, %96 : vector<2x32xf32>
    %98 = tpu.concatenate %97, %63 in 1 : vector<2x32xf32>, vector<2x32xf32> -> vector<2x64xf32>
    %c0_50 = arith.constant 0 : index
    %c0_51 = arith.constant 0 : index
    %c0_52 = arith.constant 0 : index
    %99 = vector.load %arg6[%c0_50, %c0_51, %c0_52] : memref<2x64x96xf32, #tpu.memory_space<vmem>>, vector<1x64x96xf32>
    %100 = vector.shape_cast %99 : vector<1x64x96xf32> to vector<64x96xf32>
    %cst_53 = arith.constant dense<0.000000e+00> : vector<2x96xf32>
    %101 = tpu.matmul %98, %100, %cst_53 {dimension_numbers = #tpu.dot_dimension_numbers<[1], [0], [0], [1], [0, 0, 1, 1], [], []>} : vector<2x64xf32>, vector<64x96xf32>, vector<2x96xf32> -> vector<2x96xf32>
    %c0_54 = arith.constant 0 : index
    %c0_55 = arith.constant 0 : index
    %c0_56 = arith.constant 0 : index
    %102 = vector.load %arg7[%c0_54, %c0_55, %c0_56] : memref<2x1x96xf32, #tpu.memory_space<vmem>>, vector<1x1x96xf32>
    %103 = vector.shape_cast %102 : vector<1x1x96xf32> to vector<1x96xf32>
    %104 = vector.broadcast %103 : vector<1x96xf32> to vector<2x96xf32>
    %105 = arith.addf %101, %104 : vector<2x96xf32>
    %c0_57 = arith.constant 0 : index
    %c0_58 = arith.constant 0 : index
    %c0_59 = arith.constant 0 : index
    %106 = vector.load %arg8[%c0_57, %c0_58, %c0_59] : memref<2x32x32xf32, #tpu.memory_space<vmem>>, vector<1x32x32xf32>
    %107 = vector.shape_cast %106 : vector<1x32x32xf32> to vector<32x32xf32>
    %cst_60 = arith.constant dense<0.000000e+00> : vector<2x32xf32>
    %108 = tpu.matmul %63, %107, %cst_60 {dimension_numbers = #tpu.dot_dimension_numbers<[1], [0], [0], [1], [0, 0, 1, 1], [], []>} : vector<2x32xf32>, vector<32x32xf32>, vector<2x32xf32> -> vector<2x32xf32>
    %c0_61 = arith.constant 0 : index
    %c0_62 = arith.constant 0 : index
    %c0_63 = arith.constant 0 : index
    %109 = vector.load %arg9[%c0_61, %c0_62, %c0_63] : memref<2x1x32xf32, #tpu.memory_space<vmem>>, vector<1x1x32xf32>
    %110 = vector.shape_cast %109 : vector<1x1x32xf32> to vector<1x32xf32>
    %111 = vector.broadcast %110 : vector<1x32xf32> to vector<2x32xf32>
    %112 = arith.addf %108, %111 : vector<2x32xf32>
    %113 = vector.extract_strided_slice %105 {offsets = [0, 0], sizes = [2, 64], strides = [1, 1]} : vector<2x96xf32> to vector<2x64xf32>
    %114 = arith.negf %113 : vector<2x64xf32>
    %115 = math.exp %114 : vector<2x64xf32>
    %cst_64 = arith.constant 1.000000e+00 : f32
    %116 = vector.broadcast %cst_64 : f32 to vector<2x64xf32>
    %117 = arith.addf %116, %115 : vector<2x64xf32>
    %118 = arith.divf %116, %117 : vector<2x64xf32>
    %119 = vector.extract_strided_slice %118 {offsets = [0, 0], sizes = [2, 32], strides = [1, 1]} : vector<2x64xf32> to vector<2x32xf32>
    %120 = vector.extract_strided_slice %118 {offsets = [0, 32], sizes = [2, 32], strides = [1, 1]} : vector<2x64xf32> to vector<2x32xf32>
    %121 = vector.extract_strided_slice %105 {offsets = [0, 64], sizes = [2, 32], strides = [1, 1]} : vector<2x96xf32> to vector<2x32xf32>
    %122 = arith.mulf %119, %112 : vector<2x32xf32>
    %123 = arith.addf %121, %122 : vector<2x32xf32>
    %124 = math.tanh %123 : vector<2x32xf32>
    %cst_65 = arith.constant 1.000000e+00 : f32
    %125 = vector.broadcast %cst_65 : f32 to vector<2x32xf32>
    %126 = arith.subf %125, %120 : vector<2x32xf32>
    %127 = arith.mulf %126, %124 : vector<2x32xf32>
    %128 = arith.mulf %120, %63 : vector<2x32xf32>
    %129 = arith.addf %127, %128 : vector<2x32xf32>
    %130 = tpu.concatenate %129, %95 in 1 : vector<2x32xf32>, vector<2x32xf32> -> vector<2x64xf32>
    %c1_66 = arith.constant 1 : index
    %c0_67 = arith.constant 0 : index
    %c0_68 = arith.constant 0 : index
    %131 = vector.load %arg6[%c1_66, %c0_67, %c0_68] : memref<2x64x96xf32, #tpu.memory_space<vmem>>, vector<1x64x96xf32>
    %132 = vector.shape_cast %131 : vector<1x64x96xf32> to vector<64x96xf32>
    %cst_69 = arith.constant dense<0.000000e+00> : vector<2x96xf32>
    %133 = tpu.matmul %130, %132, %cst_69 {dimension_numbers = #tpu.dot_dimension_numbers<[1], [0], [0], [1], [0, 0, 1, 1], [], []>} : vector<2x64xf32>, vector<64x96xf32>, vector<2x96xf32> -> vector<2x96xf32>
    %c1_70 = arith.constant 1 : index
    %c0_71 = arith.constant 0 : index
    %c0_72 = arith.constant 0 : index
    %134 = vector.load %arg7[%c1_70, %c0_71, %c0_72] : memref<2x1x96xf32, #tpu.memory_space<vmem>>, vector<1x1x96xf32>
    %135 = vector.shape_cast %134 : vector<1x1x96xf32> to vector<1x96xf32>
    %136 = vector.broadcast %135 : vector<1x96xf32> to vector<2x96xf32>
    %137 = arith.addf %133, %136 : vector<2x96xf32>
    %c1_73 = arith.constant 1 : index
    %c0_74 = arith.constant 0 : index
    %c0_75 = arith.constant 0 : index
    %138 = vector.load %arg8[%c1_73, %c0_74, %c0_75] : memref<2x32x32xf32, #tpu.memory_space<vmem>>, vector<1x32x32xf32>
    %139 = vector.shape_cast %138 : vector<1x32x32xf32> to vector<32x32xf32>
    %cst_76 = arith.constant dense<0.000000e+00> : vector<2x32xf32>
    %140 = tpu.matmul %95, %139, %cst_76 {dimension_numbers = #tpu.dot_dimension_numbers<[1], [0], [0], [1], [0, 0, 1, 1], [], []>} : vector<2x32xf32>, vector<32x32xf32>, vector<2x32xf32> -> vector<2x32xf32>
    %c1_77 = arith.constant 1 : index
    %c0_78 = arith.constant 0 : index
    %c0_79 = arith.constant 0 : index
    %141 = vector.load %arg9[%c1_77, %c0_78, %c0_79] : memref<2x1x32xf32, #tpu.memory_space<vmem>>, vector<1x1x32xf32>
    %142 = vector.shape_cast %141 : vector<1x1x32xf32> to vector<1x32xf32>
    %143 = vector.broadcast %142 : vector<1x32xf32> to vector<2x32xf32>
    %144 = arith.addf %140, %143 : vector<2x32xf32>
    %145 = vector.extract_strided_slice %137 {offsets = [0, 0], sizes = [2, 64], strides = [1, 1]} : vector<2x96xf32> to vector<2x64xf32>
    %146 = arith.negf %145 : vector<2x64xf32>
    %147 = math.exp %146 : vector<2x64xf32>
    %cst_80 = arith.constant 1.000000e+00 : f32
    %148 = vector.broadcast %cst_80 : f32 to vector<2x64xf32>
    %149 = arith.addf %148, %147 : vector<2x64xf32>
    %150 = arith.divf %148, %149 : vector<2x64xf32>
    %151 = vector.extract_strided_slice %150 {offsets = [0, 0], sizes = [2, 32], strides = [1, 1]} : vector<2x64xf32> to vector<2x32xf32>
    %152 = vector.extract_strided_slice %150 {offsets = [0, 32], sizes = [2, 32], strides = [1, 1]} : vector<2x64xf32> to vector<2x32xf32>
    %153 = vector.extract_strided_slice %137 {offsets = [0, 64], sizes = [2, 32], strides = [1, 1]} : vector<2x96xf32> to vector<2x32xf32>
    %154 = arith.mulf %151, %144 : vector<2x32xf32>
    %155 = arith.addf %153, %154 : vector<2x32xf32>
    %156 = math.tanh %155 : vector<2x32xf32>
    %cst_81 = arith.constant 1.000000e+00 : f32
    %157 = vector.broadcast %cst_81 : f32 to vector<2x32xf32>
    %158 = arith.subf %157, %152 : vector<2x32xf32>
    %159 = arith.mulf %158, %156 : vector<2x32xf32>
    %160 = arith.mulf %152, %95 : vector<2x32xf32>
    %161 = arith.addf %159, %160 : vector<2x32xf32>
    %162 = vector.extract_strided_slice %161 {offsets = [0, 0], sizes = [1, 32], strides = [1, 1]} : vector<2x32xf32> to vector<1x32xf32>
    %c0_82 = arith.constant 0 : index
    %c0_83 = arith.constant 0 : index
    %163 = vector.load %arg10[%c0_82, %c0_83] : memref<32x16xf32, #tpu.memory_space<vmem>>, vector<32x16xf32>
    %cst_84 = arith.constant dense<0.000000e+00> : vector<1x16xf32>
    %164 = tpu.matmul %162, %163, %cst_84 {dimension_numbers = #tpu.dot_dimension_numbers<[1], [0], [0], [1], [0, 0, 1, 1], [], []>} : vector<1x32xf32>, vector<32x16xf32>, vector<1x16xf32> -> vector<1x16xf32>
    %c0_85 = arith.constant 0 : index
    %c0_86 = arith.constant 0 : index
    %165 = vector.load %arg11[%c0_85, %c0_86] : memref<1x16xf32, #tpu.memory_space<vmem>>, vector<1x16xf32>
    %166 = arith.addf %164, %165 : vector<1x16xf32>
    %cst_87 = arith.constant dense<0xFF800000> : vector<1xf32>
    %167 = vector.multi_reduction <maximumf>, %166, %cst_87 [1] : vector<1x16xf32> to vector<1xf32>
    %168 = vector.shape_cast %167 : vector<1xf32> to vector<1x1xf32>
    %169 = vector.broadcast %168 : vector<1x1xf32> to vector<1x16xf32>
    %170 = arith.subf %166, %169 : vector<1x16xf32>
    %171 = math.exp %170 : vector<1x16xf32>
    %cst_88 = arith.constant dense<0.000000e+00> : vector<1xf32>
    %172 = vector.multi_reduction <add>, %171, %cst_88 [1] : vector<1x16xf32> to vector<1xf32>
    %173 = vector.shape_cast %172 : vector<1xf32> to vector<1x1xf32>
    %174 = math.log %173 : vector<1x1xf32>
    %175 = arith.addf %174, %168 : vector<1x1xf32>
    %176 = vector.broadcast %175 : vector<1x1xf32> to vector<1x16xf32>
    %177 = arith.subf %166, %176 : vector<1x16xf32>
    %cst_89 = arith.constant 0.000000e+00 : f32
    %178 = vector.broadcast %cst_89 : f32 to vector<1x112xf32>
    %179 = tpu.concatenate %177, %178 in 1 : vector<1x16xf32>, vector<1x112xf32> -> vector<1x128xf32>
    %180 = tpu.concatenate %129, %161 in 0 : vector<2x32xf32>, vector<2x32xf32> -> vector<4x32xf32>
    %cst_90 = arith.constant 0.000000e+00 : f32
    %181 = vector.broadcast %cst_90 : f32 to vector<4x96xf32>
    %182 = tpu.concatenate %180, %181 in 1 : vector<4x32xf32>, vector<4x96xf32> -> vector<4x128xf32>
    %cst_91 = arith.constant 0.000000e+00 : f32
    %183 = vector.broadcast %cst_91 : f32 to vector<3x128xf32>
    %184 = tpu.concatenate %179, %182, %183 in 0 : vector<1x128xf32>, vector<4x128xf32>, vector<3x128xf32> -> vector<8x128xf32>
    %c0_92 = arith.constant 0 : index
    %c0_93 = arith.constant 0 : index
    %c0_94 = arith.constant 0 : index
    %185 = vector.load %arg12[%c0_92, %c0_93, %c0_94] : memref<1x8x128xf32, #tpu.memory_space<vmem>>, vector<1x8x128xf32>
    %186 = vector.shape_cast %185 : vector<1x8x128xf32> to vector<8x128xf32>
    %187 = vector.shape_cast %184 : vector<8x128xf32> to vector<1x8x128xf32>
    tpu.vector_store %arg12[%c0_92, %c0_93, %c0_94], %187 {strides = array<i32>} : memref<1x8x128xf32, #tpu.memory_space<vmem>>, vector<1x8x128xf32>,
    return
  }
  func.func @transform_0(%arg0: i32, %arg1: memref<1x2xi32, #tpu.memory_space<smem>>) -> (i32, i32, i32) {
    %c0_i32 = arith.constant 0 : i32
    %c0_i32_0 = arith.constant 0 : i32
    %c0_i32_1 = arith.constant 0 : i32
    return %arg0, %c0_i32, %c0_i32_0 : i32, i32, i32
  }
  func.func @transform_1(%arg0: i32, %arg1: memref<1x2xi32, #tpu.memory_space<smem>>) -> (i32, i32, i32, i32) {
    %c0_i32 = arith.constant 0 : i32
    %c0_i32_0 = arith.constant 0 : i32
    %c0_i32_1 = arith.constant 0 : i32
    %c0_i32_2 = arith.constant 0 : i32
    return %arg0, %c0_i32, %c0_i32_0, %c0_i32_1 : i32, i32, i32, i32
  }
  func.func @transform_2(%arg0: i32, %arg1: memref<1x2xi32, #tpu.memory_space<smem>>) -> (i32, i32) {
    %c0_i32 = arith.constant 0 : i32
    %c0_i32_0 = arith.constant 0 : i32
    %c0_i32_1 = arith.constant 0 : i32
    return %c0_i32, %c0_i32_0 : i32, i32
  }
  func.func @transform_3(%arg0: i32, %arg1: memref<1x2xi32, #tpu.memory_space<smem>>) -> (i32, i32) {
    %c0_i32 = arith.constant 0 : i32
    %c0_i32_0 = arith.constant 0 : i32
    %c0_i32_1 = arith.constant 0 : i32
    return %c0_i32, %c0_i32_0 : i32, i32
  }
  func.func @transform_4(%arg0: i32, %arg1: memref<1x2xi32, #tpu.memory_space<smem>>) -> (i32, i32, i32) {
    %c0_i32 = arith.constant 0 : i32
    %c0_i32_0 = arith.constant 0 : i32
    %c0_i32_1 = arith.constant 0 : i32
    %c0_i32_2 = arith.constant 0 : i32
    return %c0_i32, %c0_i32_0, %c0_i32_1 : i32, i32, i32
  }
  func.func @transform_5(%arg0: i32, %arg1: memref<1x2xi32, #tpu.memory_space<smem>>) -> (i32, i32, i32) {
    %c0_i32 = arith.constant 0 : i32
    %c0_i32_0 = arith.constant 0 : i32
    %c0_i32_1 = arith.constant 0 : i32
    %c0_i32_2 = arith.constant 0 : i32
    return %c0_i32, %c0_i32_0, %c0_i32_1 : i32, i32, i32
  }
  func.func @transform_6(%arg0: i32, %arg1: memref<1x2xi32, #tpu.memory_space<smem>>) -> (i32, i32, i32) {
    %c0_i32 = arith.constant 0 : i32
    %c0_i32_0 = arith.constant 0 : i32
    %c0_i32_1 = arith.constant 0 : i32
    %c0_i32_2 = arith.constant 0 : i32
    return %c0_i32, %c0_i32_0, %c0_i32_1 : i32, i32, i32
  }
  func.func @transform_7(%arg0: i32, %arg1: memref<1x2xi32, #tpu.memory_space<smem>>) -> (i32, i32, i32) {
    %c0_i32 = arith.constant 0 : i32
    %c0_i32_0 = arith.constant 0 : i32
    %c0_i32_1 = arith.constant 0 : i32
    %c0_i32_2 = arith.constant 0 : i32
    return %c0_i32, %c0_i32_0, %c0_i32_1 : i32, i32, i32
  }
  func.func @transform_8(%arg0: i32, %arg1: memref<1x2xi32, #tpu.memory_space<smem>>) -> (i32, i32) {
    %c0_i32 = arith.constant 0 : i32
    %c0_i32_0 = arith.constant 0 : i32
    %c0_i32_1 = arith.constant 0 : i32
    return %c0_i32, %c0_i32_0 : i32, i32
  }
  func.func @transform_9(%arg0: i32, %arg1: memref<1x2xi32, #tpu.memory_space<smem>>) -> (i32, i32) {
    %c0_i32 = arith.constant 0 : i32
    %c0_i32_0 = arith.constant 0 : i32
    %c0_i32_1 = arith.constant 0 : i32
    return %c0_i32, %c0_i32_0 : i32, i32
  }
  func.func @transform_10(%arg0: i32, %arg1: memref<1x2xi32, #tpu.memory_space<smem>>) -> (i32, i32, i32) {
    %c0_i32 = arith.constant 0 : i32
    %c0_i32_0 = arith.constant 0 : i32
    %c0_i32_1 = arith.constant 0 : i32
    return %arg0, %c0_i32, %c0_i32_0 : i32, i32, i32
  }
}

</mosaic_0001>

<bundles_post_ra>
// kernel: tpu_custom_call.1
= control target key start
LH: loop header
LB: loop body
LE: loop exit
PB: predicated region body
PF: predicated region fallthrough
CT: control target
= control target key end

     0   :  { %s2018_s0 = inlined_call_operand.hbm [shape: s32[1,2], index: 0, kind: input, shape index: {}]   ;;  %s2019_s1 = inlined_call_operand.vmem [shape: f32[1,2,16], index: 1, kind: input, shape index: {}]   ;;  %s2020_s2 = inlined_call_operand.hbm [shape: f32[1,2,2,32], index: 2, kind: input, shape index: {}]   ;;  %s2021_s3 = inlined_call_operand.hbm [shape: f32[32,32], index: 3, kind: input, shape index: {}]   ;;  %s2022_s4 = inlined_call_operand.hbm [shape: f32[1,32], index: 4, kind: input, shape index: {}]   ;;  %s2023_s5 = inlined_call_operand.hbm [shape: f32[2,64,96], index: 5, kind: input, shape index: {}]   ;;  %s2024_s6 = inlined_call_operand.hbm [shape: f32[2,1,96], index: 6, kind: input, shape index: {}]   ;;  %s2025_s7 = inlined_call_operand.vmem [shape: f32[2,32,32], index: 7, kind: input, shape index: {}]   ;;  %s2026_s8 = inlined_call_operand.hbm [shape: f32[2,1,32], index: 8, kind: input, shape index: {}]   ;;  %s2027_s9 = inlined_call_operand.vmem [shape: f32[32,16], index: 9, kind: input, shape index: {}]   ;;  %s2028_s10 = inlined_call_operand.vmem [shape: f32[1,16], index: 10, kind: input, shape index: {}]   ;;  %s2029_s11 = inlined_call_operand.hbm [shape: f32[1,8,128], index: 11, kind: output, shape index: {}]  }
   0x1   :  { %s1477_s19 = scalar_lea.hbm %s2018_s0, 16 }
   0x2   :  { %p1478_p0 = scmp.ne.s32.totalorder %s2018_s0, %s1477_s19  ;;  %p1481_p1 = scmp.lt.u32.totalorder %s1477_s19, %s2018_s0 }
   0x4   :  { %p1483_p2 = pnand %p1481_p1, %p1478_p0 }
   0x6   :  { %1486 = shalt.err (!%p1483_p2)  }
   0x7   :  { %s1653_s24 = smov [#allocation3]  }
   0x8   :  { %17 = dma.hbm_to_smem %s2018_s0, 16, %s1653_s24, [#allocation2] }
   0x9   :  { %1641 = dma.done.wait [#allocation2], 16 }
   0xa   :  { %1642 = vsyncadd [#allocation2], 4294967280 }
   0xb   :  { %19 = sfence }
   0xc   :  { %20 = vsyncpa [#allocation5], 0 }
   0xd   :  { %21 = vsyncpa [#allocation8], 0 }
   0xe   :  { %22 = vsyncpa [#allocation11], 0 }
   0xf   :  { %23 = vsyncpa [#allocation14], 0 }
  0x10   :  { %24 = vsyncpa [#allocation6], 0  ;;  %s1654_s27 = smov [#allocation7]   ;;  %s1487_s12 = scalar_lea.hbm %s2021_s3, 512 }
  0x11   :  { %s44_s28 = sshll.u32 %s1654_s27, 4  ;;  %p1488_p3 = scmp.ne.s32.totalorder %s2021_s3, %s1487_s12  ;;  %s45_s28 = int_to_ptr.vmem [resolvable:$true] %s44_s28 }
  0x12   :  { %p1491_p4 = scmp.lt.u32.totalorder %s1487_s12, %s2021_s3 }
  0x14   :  { %p1493_p5 = pnand %p1491_p4, %p1488_p3 }
  0x16   :  { %1496 = shalt.err (!%p1493_p5)
}
  0x17   :  { %s1497_s16 = scalar_lea.vmem %s45_s28, 512  ;;  %p1502_p7 = scmp.lt.s32.totalorder %s45_s28, %s45_s28 }
  0x18   :  { %p1498_p6 = scmp.ne.s32.totalorder %s45_s28, %s1497_s16  ;;  %p1503_p8 = scmp.lt.s32.totalorder %s1497_s16, %s1497_s16 }
  0x1a   :  { %p1504_p9 = por %p1503_p8, %p1502_p7 }
  0x1c   :  { %p1505_p10 = pnand %p1504_p9, %p1498_p6 }
  0x1e   :  { %1508 = shalt.err (!%p1505_p10)
}
  0x1f   :  { %s1655_s17 = smov 128   ;;  %s1656_s18 = smov 8  }
  0x20   :  { %50 = dma.hbm_to_vmem [thread:$0]  %s2021_s3, 512, %s45_s28, [#allocation8], %s1655_s17, %s1655_s17, %s1656_s18  }
  0x21   :  { %s1657_s21 = smov [#allocation10]   ;;  %s1658_s23 = smov [#allocation4]  }
  0x22   :  { %s66_s22 = sshll.u32 %s1657_s21, 4  ;;  %s32_s24 = sshll.u32 %s1658_s23, 4  ;;  %s67_s22 = int_to_ptr.vmem [resolvable:$true] %s66_s22  ;;  %s33_s24 = int_to_ptr.vmem [resolvable:$true] %s32_s24 }
  0x23   :  { %s1509_s27 = scalar_lea.hbm %s2023_s5, 2048 }
  0x24   :  { %p1510_p11 = scmp.ne.s32.totalorder %s2023_s5, %s1509_s27  ;;  %p1513_p12 = scmp.lt.u32.totalorder %s1509_s27, %s2023_s5 }
  0x26   :  { %p1515_p13 = pnand %p1513_p12, %p1510_p11 }
  0x28   :  { %1518 = shalt.err (!%p1515_p13)
}
  0x29   :  { %s1519_s3 = scalar_lea.vmem %s67_s22, 2048  ;;  %p1524_p1 = scmp.lt.s32.totalorder %s67_s22, %s67_s22 }
  0x2a   :  { %p1520_p0 = scmp.ne.s32.totalorder %s67_s22, %s1519_s3  ;;  %p1525_p2 = scmp.lt.s32.totalorder %s1519_s3, %s1519_s3 }
  0x2c   :  { %p1526_p3 = por %p1525_p2, %p1524_p1 }
  0x2e   :  { %p1527_p4 = pnand %p1526_p3, %p1520_p0 }
  0x30   :  { %1530 = shalt.err (!%p1527_p4)
}
  0x31   :  { %72 = dma.hbm_to_vmem [thread:$0]  %s2023_s5, 2048, %s67_s22, [#allocation11], %s1655_s17, %s1655_s17, %s1656_s18  }
  0x32   :  { %s1531_s16 = scalar_lea.hbm %s2020_s2, 64 }
  0x33   :  { %p1532_p5 = scmp.ne.s32.totalorder %s2020_s2, %s1531_s16  ;;  %p1535_p6 = scmp.lt.u32.totalorder %s1531_s16, %s2020_s2 }
  0x35   :  { %p1537_p7 = pnand %p1535_p6, %p1532_p5 }
  0x37   :  { %1540 = shalt.err (!%p1537_p7)
}
  0x38   :  { %s1541_s25 = scalar_lea.vmem %s33_s24, 64  ;;  %p1546_p9 = scmp.lt.s32.totalorder %s33_s24, %s33_s24 }
  0x39   :  { %p1542_p8 = scmp.ne.s32.totalorder %s33_s24, %s1541_s25  ;;  %p1547_p10 = scmp.lt.s32.totalorder %s1541_s25, %s1541_s25 }
  0x3b   :  { %p1548_p11 = por %p1547_p10, %p1546_p9 }
  0x3d   :  { %p1549_p12 = pnand %p1548_p11, %p1542_p8 }
  0x3f   :  { %1552 = shalt.err (!%p1549_p12)
}
  0x40   :  { %s1659_s5 = smov 32   ;;  %s1660_s17 = smov 2  }
  0x41   :  { %38 = dma.hbm_to_vmem [thread:$0]  %s2020_s2, 64, %s33_s24, [#allocation5], %s1659_s5, %s1659_s5, %s1660_s17  }
  0x42   :  { %s1661_s26 = smov [#allocation9]   ;;  %s1662_s29 = smov [#allocation12]  }
  0x43   :  { %s57_s27 = sshll.u32 %s1661_s26, 4  ;;  %s78_s30 = sshll.u32 %s1662_s29, 4  ;;  %s58_s27 = int_to_ptr.vmem [resolvable:$true] %s57_s27  ;;  %s79_s30 = int_to_ptr.vmem [resolvable:$true] %s78_s30 }
  0x44   :  { %s1553_s3 = scalar_lea.hbm %s2022_s4, 16 }
  0x45   :  { %p1554_p13 = scmp.ne.s32.totalorder %s2022_s4, %s1553_s3  ;;  %p1557_p0 = scmp.lt.u32.totalorder %s1553_s3, %s2022_s4 }
  0x47   :  { %p1559_p1 = pnand %p1557_p0, %p1554_p13 }
  0x49   :  { %1562 = shalt.err (!%p1559_p1)
}
  0x4a   :  { %s1563_s2 = scalar_lea.vmem %s58_s27, 16  ;;  %s1567_s24 = scalar_lea.vmem %s58_s27, 32 }
  0x4b   :  { %p1564_p2 = scmp.ne.s32.totalorder %s58_s27, %s1563_s2  ;;  %p1568_p3 = scmp.lt.s32.totalorder %s58_s27, %s58_s27 }
  0x4c   :  { %p1569_p4 = scmp.lt.s32.totalorder %s1567_s24, %s1563_s2 }
  0x4e   :  { %p1570_p5 = por %p1569_p4, %p1568_p3 }
  0x50   :  { %p1571_p6 = pnand %p1570_p5, %p1564_p2 }
  0x52   :  { %1574 = shalt.err (!%p1571_p6)
}
  0x53   :  { %60 = dma.hbm_to_vmem [thread:$0]  %s2022_s4, 16, %s58_s27, [#allocation8]  }
  0x54   :  { %s1575_s23 = scalar_lea.hbm %s2024_s6, 32 }
  0x55   :  { %p1576_p7 = scmp.ne.s32.totalorder %s2024_s6, %s1575_s23  ;;  %p1579_p8 = scmp.lt.u32.totalorder %s1575_s23, %s2024_s6 }
  0x57   :  { %p1581_p9 = pnand %p1579_p8, %p1576_p7 }
  0x59   :  { %1584 = shalt.err (!%p1581_p9)
}
  0x5a   :  { %s1585_s26 = scalar_lea.vmem %s79_s30, 32  ;;  %p1590_p11 = scmp.lt.s32.totalorder %s79_s30, %s79_s30 }
  0x5b   :  { %p1586_p10 = scmp.ne.s32.totalorder %s79_s30, %s1585_s26  ;;  %p1591_p12 = scmp.lt.s32.totalorder %s1585_s26, %s1585_s26 }
  0x5d   :  { %p1592_p13 = por %p1591_p12, %p1590_p11 }
  0x5f   :  { %p1593_p0 = pnand %p1592_p13, %p1586_p10 }
  0x61   :  { %1596 = shalt.err (!%p1593_p0)
}
  0x62   :  { %s1663_s4 = smov 16   ;;  %s1664_s27 = smov 1  }
  0x63   :  { %84 = dma.hbm_to_vmem [thread:$0]  %s2024_s6, 32, %s79_s30, [#allocation11], %s1663_s4, %s1663_s4, %s1664_s27  }
  0x64   :  { %s1665_s13 = smov [#allocation13]   ;;  %s1597_s0 = scalar_lea.hbm %s2026_s8, 32 }
  0x65   :  { %s92_s3 = sshll.u32 %s1665_s13, 4  ;;  %p1598_p1 = scmp.ne.s32.totalorder %s2026_s8, %s1597_s0  ;;  %s93_s3 = int_to_ptr.vmem [resolvable:$true] %s92_s3 }
  0x66   :  { %p1601_p2 = scmp.lt.u32.totalorder %s1597_s0, %s2026_s8 }
  0x68   :  { %p1603_p3 = pnand %p1601_p2, %p1598_p1 }
  0x6a   :  { %1606 = shalt.err (!%p1603_p3)
}
  0x6b   :  { %s1607_s19 = scalar_lea.vmem %s93_s3, 32  ;;  %p1612_p5 = scmp.lt.s32.totalorder %s93_s3, %s93_s3 }
  0x6c   :  { %p1608_p4 = scmp.ne.s32.totalorder %s93_s3, %s1607_s19  ;;  %p1613_p6 = scmp.lt.s32.totalorder %s1607_s19, %s1607_s19 }
  0x6e   :  { %p1614_p7 = por %p1613_p6, %p1612_p5 }
  0x70   :  { %p1615_p8 = pnand %p1614_p7, %p1608_p4 }
  0x72   :  { %1618 = shalt.err (!%p1615_p8)
}
  0x73   :  { %98 = dma.hbm_to_vmem [thread:$0]  %s2026_s8, 32, %s93_s3, [#allocation14], %s1663_s4, %s1663_s4, %s1664_s27  }
  0x74   :  { %1643 = dma.done.wait [#allocation5], 64  }
  0x75   :  { %1644 = vsyncadd [#allocation5], 4294967232 }
  0x76   :  { %1645 = dma.done.wait [#allocation8], 528  }
  0x77   :  { %1646 = vsyncadd [#allocation8], 4294966768 }
  0x78   :  { %1647 = dma.done.wait [#allocation11], 2080  }
  0x79   :  { %1648 = vsyncadd [#allocation11], 4294965216 }
  0x7a   :  { %1649 = dma.done.wait [#allocation14], 32  }
  0x7b   :  { %1650 = vsyncadd [#allocation14], 4294967264  ;;  %v1666_v0 = vmov 0.0|0.0   ;;  %vm1667_vm0 = vmmov 0   ;;  %v1668_v1 = vmov 0.0   ;;  %v145_v3 = vld [vmem:[#allocation7] sm:$0xff]  ;;  %v121_v19 = vlaneseq }
  0x7c   :  { %1346 = vmatprep.subr.bf16.mxu0 %v1666_v0  ;;  %1352 = vmatprep.subr.bf16.mxu1 %v1666_v0  ;;  %v138_v2 = vld [vmem:[%s2019_s1] sm:$0x3]  ;;  %v146_v4 = vld [vmem:[#allocation7 + $0x8] sm:$0xff]  ;;  %v147_v6 = vld [vmem:[#allocation7 + $0x10] sm:$0xff]  ;;  %s127_s1 = sld [smem:[#allocation3]]  ;;  %s1113_s21 = sld [smem:[#allocation3 + $0x1]] }
  0x7d   :  { %1212 = vmatprep.mubr.msk.f32.mxu0 %vm1667_vm0, %v1668_v1  ;;  %1231 = vmatprep.mubr.msk.f32.mxu1 %vm1667_vm0, %v1668_v1  ;;  %v1347_v5 = vpack.c.bf16 %v146_v4, %v145_v3  ;;  %v148_v7 = vld [vmem:[#allocation7 + $0x18] sm:$0xff]  ;;  %v239_v9 = vld [vmem:[#allocation10] sm:$0xff]  ;;  %v240_v10 = vld [vmem:[#allocation10 + $0x8] sm:$0xff]  ;;  %v124_v20 = vshrl.u32 %v121_v19, 7  ;;  %v122_v24 = vand.u32 127, %v121_v19  ;;  %vm143_vm4 = vcmask 130048  }
  0x7e   :  { %140 = vrot.lane.b32.xlu0 %v138_v2, %s1663_s4  ;;  %v230_v8 = vld [vmem:[#allocation4] sm:$0x3]  ;;  %v241_v11 = vld [vmem:[#allocation10 + $0x10] sm:$0xff]  ;;  %v1350_v12 = vpack.c.bf16 %v148_v7, %v147_v6  ;;  %v1832_v13 = vpack.c.bf16 %v240_v10, %v239_v9  ;;  %v243_v16 = vld [vmem:[#allocation10 + $0x20] sm:$0xff]  ;;  %vm156_vm5 = vcmask 261120   ;;  %vm254_vm6 = vcmask 523264  }
  0x7f   :  { %1348 = vmatpush3.bf16.msra.mxu0 %v1347_v5  ;;  %v242_v14 = vld [vmem:[#allocation10 + $0x18] sm:$0xff]  ;;  %v244_v17 = vld [vmem:[#allocation10 + $0x28] sm:$0xff]  ;;  %vm125_vm1 = vcmp.eq.s32.totalorder %v124_v20, 0  ;;  %vm130_vm2 = vcmp.eq.s32.totalorder %v124_v20, 1  ;;  %v245_v29 = vld [vmem:[#allocation10 + $0x30] sm:$0xff]  ;;  %s1669_s29 = smov 64  }
  0x80   :  { %1349 = vmatprep.subr.bf16.mxu0 %v1666_v0  ;;  %1354 = vmatpush3.bf16.msra.mxu1 %v1832_v13  ;;  %v1837_v15 = vpack.c.bf16 %v242_v14, %v241_v11  ;;  %v1842_v18 = vpack.c.bf16 %v244_v17, %v243_v16  ;;  %v246_v30 = vld [vmem:[#allocation10 + $0x38] sm:$0xff]  ;;  %v329_v33 = vld [vmem:[%s2025_s7 + $0x8] sm:$0xff]  ;;  %v330_v34 = vld [vmem:[%s2025_s7 + $0x10] sm:$0xff]  ;;  %s1670_s12 = smov 96   ;;  %vm1063_vm7 = vcmask 122880   ;;  %vm1080_vm8 = vcmask 1041408  }
  0x81   :  { %1355 = vmatprep.subr.bf16.mxu1 %v1666_v0  ;;  %v1852_v31 = vpack.c.bf16 %v246_v30, %v245_v29  ;;  %v328_v32 = vld [vmem:[%s2025_s7] sm:$0xff]  ;;  %v331_v36 = vld [vmem:[%s2025_s7 + $0x18] sm:$0xff]  ;;  %v1886_v54 = vld [vmem:[#allocation13] ss:$0 sm:$0xff]  ;;  %vm1090_vm9 = vcmask 1040384   ;;  %vm1092_vm10 = vcmask 1044480  }
  0x82   :  { %235 = vrot.lane.b32.xlu0 %v230_v8, %s1659_s5  ;;  %v128_v21 = vstv %s127_s1  ;;  %v133_v23 = vstv %s1113_s21  ;;  %v1865_v35 = vpack.c.bf16 %v329_v33, %v328_v32  ;;  %v1871_v37 = vpack.c.bf16 %v331_v36, %v330_v34  ;;  %v1115_v38 = vld [vmem:[#allocation9] ss:$0 sm:$0xff]  ;;  %v1883_v47 = vld [vmem:[#allocation12] ss:$0 sm:$0xff]  ;;  %v443_v61 = vld [vmem:[#allocation10 + $0x48] sm:$0xff] }
  0x83   :  { %1351 = vmatpush3.bf16.msra.mxu0 %v1350_v12  ;;  %v129_v22 = vsel %vm125_vm1, %v128_v21, 0  ;;  %v442_v60 = vld [vmem:[#allocation10 + $0x40] sm:$0xff]  ;;  %v444_v62 = vld [vmem:[#allocation10 + $0x50] sm:$0xff]  ;;  %v445_v2 = vld [vmem:[#allocation10 + $0x58] sm:$0xff] }
  0x84   :  { %1364 = vmatprep.subr.bf16.mxu0 %v1666_v0  ;;  %1357 = vmatpush3.bf16.msra.mxu1 %v1837_v15  ;;  %v134_v25 = vsel %vm130_vm2, %v133_v23, %v129_v22  ;;  %v1371_v63 = vpack.c.bf16 %v443_v61, %v442_v60  ;;  %v1374_v3 = vpack.c.bf16 %v445_v2, %v444_v62  ;;  %v446_v4 = vld [vmem:[#allocation10 + $0x60] sm:$0xff]  ;;  %v447_v5 = vld [vmem:[#allocation10 + $0x68] sm:$0xff]  ;;  %v449_v9 = vld [vmem:[#allocation10 + $0x78] sm:$0xff] }
  0x85   :  { %1358 = vmatprep.subr.bf16.mxu1 %v1666_v0  ;;  %vm135_vm3 = vcmp.eq.s32.totalorder %v122_v24, %v134_v25  ;;  %v1377_v6 = vpack.c.bf16 %v447_v5, %v446_v4  ;;  %v232_v10 = vld [vmem:[#allocation4 + $0x2] sm:$0x3]  ;;  %v1125_v20 = vld [vmem:[%s2025_s7 + $0x28] sm:$0xff]  ;;  %v1126_v21 = vld [vmem:[%s2025_s7 + $0x30] sm:$0xff] }
  0x86   :  { %v1114_v26 = vsel %vm135_vm3, 1.0, %v1668_v1  ;;  %v1124_v19 = vld [vmem:[%s2025_s7 + $0x20] sm:$0xff]  ;;  %v1127_v23 = vld [vmem:[%s2025_s7 + $0x38] sm:$0xff] }
  0x87   :  { %v1905_v22 = vpack.c.bf16 %v1125_v20, %v1124_v19  ;;  %v1913_v25 = vpack.c.bf16 %v1127_v23, %v1126_v21 }
  0x88   :  { %1360 = vmatpush3.bf16.msra.mxu1 %v1842_v18 }
  0x89   :  { %1361 = vmatprep.subr.bf16.mxu1 %v1666_v0 }
  0x8c   :  { %1363 = vmatpush3.bf16.msra.mxu1 %v1852_v31 }
  0x8d   :  { %1382 = vmatprep.subr.bf16.mxu1 %v1666_v0 }
  0xf0   :  { %v141_v27 = vpop.permute.xlu0 %140 }
  0xf1   :  { %v144_v28 = vsel %vm143_vm4, %v1114_v26, %v141_v27 }
  0xf2   :  { %1213 = vmatmul.mubr.msk.f32.vlgmr.msra.gmra.mrb[0].mxu0 %vm156_vm5, %v144_v28  ;;  %v1945_v28 = vld [vmem:[#allocation12 + $0x1] ss:$0 sm:$0xff] }
  0xf3   :  { %1242 = vmatprep.mubr.msk.f32.mxu0 %vm1667_vm0, %v1668_v1  ;;  %1366 = vmatpush3.bf16.msra.mxu0 %v1865_v35 }
  0xf4   :  { %1367 = vmatprep.subr.bf16.mxu0 %v1666_v0  ;;  %v236_v42 = vpop.permute.xlu0 %235 }
  0xf7   :  { %1369 = vmatpush3.bf16.msra.mxu0 %v1871_v37 }
  0xf8   :  { %1370 = vmatprep.subr.bf16.mxu0 %v1666_v0 }
  0xfa   :  { %1243 = vmatmul.mubr.msk.f32.vlgmr.msra.gmra.mrb[2].mxu0 %vm156_vm5, %v230_v8  ;;  %v448_v8 = vld [vmem:[#allocation10 + $0x70] sm:$0xff] }
  0xfb   :  { %1261 = vmatprep.mubr.msk.f32.mxu0 %vm1667_vm0, %v1668_v1  ;;  %1372 = vmatpush3.bf16.msra.mxu0 %v1371_v63  ;;  %v1380_v11 = vpack.c.bf16 %v449_v9, %v448_v8 }
  0xfc   :  { %1373 = vmatprep.subr.bf16.mxu0 %v1666_v0 }
  0xff   :  { %1375 = vmatpush3.bf16.msra.mxu0 %v1374_v3 }
 0x100   :  { %1376 = vmatprep.subr.bf16.mxu0 %v1666_v0 }
 0x103   :  { %1378 = vmatpush3.bf16.msra.mxu0 %v1377_v6 }
 0x104   :  { %1379 = vmatprep.subr.bf16.mxu0 %v1666_v0 }
 0x107   :  { %1381 = vmatpush3.bf16.msra.mxu0 %v1380_v11 }
 0x108   :  { %1400 = vmatprep.subr.bf16.mxu0 %v1666_v0 }
 0x1c5   :  { %v226_v39 = vpop.f32.mrb[0].mxu0 }
 0x1c6   :  { %v227_v40 = vadd.f32 %v1115_v38, %v226_v39  ;;  %v1214_v41 = vpop.f32.mrb[1].mxu0 }
 0x1c8   :  { %v233_v43 = vmax.f32 %v227_v40, 0.0 }
 0x1ca   :  { %v238_v44 = vsel %vm156_vm5, %v233_v43, %v236_v42 }
 0x1cb   :  { %1232 = vmatmul.mubr.msk.f32.vlgmr.msra.gmra.mrb[0].mxu1 %vm254_vm6, %v238_v44 }
 0x1cc   :  { %1272 = vmatprep.mubr.msk.f32.mxu1 %vm1667_vm0, %v1668_v1  ;;  %1384 = vmatpush3.bf16.msra.mxu1 %v1905_v22 }
 0x1cd   :  { %v407_v45 = vpop.f32.mrb[2].mxu0  ;;  %1385 = vmatprep.subr.bf16.mxu1 %v1666_v0 }
 0x1ce   :  { %v1244_v46 = vpop.f32.mrb[3].mxu0  ;;  %v408_v55 = vadd.f32 %v1886_v54, %v407_v45 }
 0x1d0   :  { %1387 = vmatpush3.bf16.msra.mxu1 %v1913_v25 }
 0x1d1   :  { %1388 = vmatprep.subr.bf16.mxu1 %v1666_v0 }
 0x1d3   :  { %1273 = vmatmul.mubr.msk.f32.vlgmr.msra.gmra.mrb[2].mxu1 %vm156_vm5, %v232_v10 }
 0x1d4   :  { %1390 = vmatpush3.bf16.msra.mxu1 %v1832_v13  ;;  %1291 = vmatprep.mubr.msk.f32.mxu1 %vm1667_vm0, %v1668_v1 }
 0x1d5   :  { %1391 = vmatprep.subr.bf16.mxu1 %v1666_v0 }
 0x1d8   :  { %1393 = vmatpush3.bf16.msra.mxu1 %v1837_v15 }
 0x1d9   :  { %1394 = vmatprep.subr.bf16.mxu1 %v1666_v0 }
 0x1dc   :  { %1396 = vmatpush3.bf16.msra.mxu1 %v1842_v18 }
 0x1dd   :  { %1397 = vmatprep.subr.bf16.mxu1 %v1666_v0 }
 0x1e0   :  { %1399 = vmatpush3.bf16.msra.mxu1 %v1852_v31 }
 0x1e1   :  { %1418 = vmatprep.subr.bf16.mxu1 %v1666_v0 }
 0x29e   :  { %v324_v48 = vpop.f32.mrb[0].mxu1 }
 0x29f   :  { %v325_v49 = vadd.f32 %v1883_v47, %v324_v48  ;;  %v1233_v50 = vpop.f32.mrb[1].mxu1 }
 0x2a1   :  { %v1121_v51 = vmul.f32 -1.442695, %v325_v49 }
 0x2a3   :  { %1449 = vpow2.f32 %v1121_v51 }
 0x2a6   :  { %v612_v15 = vpop.f32.mrb[2].mxu1 }
 0x2a7   :  { %v1274_v18 = vpop.f32.mrb[3].mxu1 }
 0x2ad   :  { %v1450_v52 = vpop.eup %1449 }
 0x2ae   :  { %v414_v53 = vadd.f32 1.0, %v1450_v52 }
 0x2b0   :  { %1451 = vrcp.f32 %v414_v53 }
 0x2ba   :  { %v1452_v56 = vpop.eup %1451 }
 0x2bb   :  { %v417_v57 = vmul.f32 %v1452_v56, %v408_v55  ;;  %v424_v12 = vsub.f32 1.0, %v1452_v56  ;;  %v430_v16 = vmul.f32 %v1452_v56, %v236_v42 }
 0x2bd   :  { %419 = vrot.lane.b32.xlu1 %v417_v57, %s1669_s29 }
 0x32f   :  { %v420_v58 = vpop.permute.xlu1 %419 }
 0x330   :  { %v422_v59 = vadd.f32 %v420_v58, %v325_v49 }
 0x332   :  { %1453 = vtanh.f32 %v422_v59 }
 0x33c   :  { %v1454_v7 = vpop.eup %1453 }
 0x33d   :  { %426 = vrot.lane.b32.xlu1 %v1454_v7, %s1670_s12 }
 0x341   :  { %437 = vrot.lane.b32.xlu1 %v232_v10, %s1659_s5 }
 0x3af   :  { %v427_v14 = vpop.permute.xlu1 %426 }
 0x3b0   :  { %v429_v17 = vmul.f32 %v427_v14, %v424_v12 }
 0x3b2   :  { %v1910_v24 = vadd.f32 %v430_v16, %v429_v17 }
 0x3b3   :  { %v438_v26 = vpop.permute.xlu1 %437 }
 0x3b4   :  { %433 = vrot.lane.b32.xlu0 %v1910_v24, %s1670_s12 }
 0x426   :  { %v434_v27 = vpop.permute.xlu0 %433 }
 0x427   :  { %v440_v13 = vsel %vm156_vm5, %v434_v27, %v438_v26 }
 0x428   :  { %1262 = vmatmul.mubr.msk.f32.vlgmr.msra.gmra.mrb[4].mxu0 %vm254_vm6, %v440_v13 }
 0x429   :  { %1402 = vmatpush3.bf16.msra.mxu0 %v1865_v35  ;;  %1302 = vmatprep.mubr.msk.f32.mxu0 %vm1667_vm0, %v1668_v1 }
 0x42a   :  { %1403 = vmatprep.subr.bf16.mxu0 %v1666_v0 }
 0x42d   :  { %1405 = vmatpush3.bf16.msra.mxu0 %v1871_v37  ;;  %v1948_v37 = vld [vmem:[#allocation13 + $0x1] ss:$0 sm:$0xff] }
 0x42e   :  { %1406 = vmatprep.subr.bf16.mxu0 %v1666_v0  ;;  %v613_v38 = vadd.f32 %v1948_v37, %v612_v15  ;;  %v986_v15 = vld [vmem:[%s2027_s9 + $0x18] sm:$0xff] }
 0x430   :  { %1303 = vmatmul.mubr.msk.f32.vlgmr.msra.gmra.mrb[6].mxu0 %vm156_vm5, %v434_v27  ;;  %v985_v27 = vld [vmem:[%s2027_s9 + $0x10] sm:$0xff] }
 0x431   :  { %1408 = vmatpush3.bf16.msra.mxu0 %v1371_v63  ;;  %1321 = vmatprep.mubr.msk.f32.mxu0 %vm1667_vm0, %v1668_v1  ;;  %v1428_v18 = vpack.c.bf16 %v986_v15, %v985_v27 }
 0x432   :  { %1409 = vmatprep.subr.bf16.mxu0 %v1666_v0 }
 0x435   :  { %1411 = vmatpush3.bf16.msra.mxu0 %v1374_v3 }
 0x436   :  { %1412 = vmatprep.subr.bf16.mxu0 %v1666_v0 }
 0x439   :  { %1414 = vmatpush3.bf16.msra.mxu0 %v1377_v6 }
 0x43a   :  { %1415 = vmatprep.subr.bf16.mxu0 %v1666_v0 }
 0x43d   :  { %1417 = vmatpush3.bf16.msra.mxu0 %v1380_v11 }
 0x4fb   :  { %v527_v29 = vpop.f32.mrb[4].mxu0 }
 0x4fc   :  { %v528_v30 = vadd.f32 %v1945_v28, %v527_v29  ;;  %v1263_v31 = vpop.f32.mrb[5].mxu0 }
 0x4fe   :  { %v1130_v32 = vmul.f32 -1.442695, %v528_v30 }
 0x500   :  { %1455 = vpow2.f32 %v1130_v32 }
 0x503   :  { %v784_v33 = vpop.f32.mrb[6].mxu0 }
 0x504   :  { %v1304_v34 = vpop.f32.mrb[7].mxu0  ;;  %v785_v60 = vadd.f32 %v1886_v54, %v784_v33 }
 0x50a   :  { %v1456_v35 = vpop.eup %1455 }
 0x50b   :  { %v619_v36 = vadd.f32 1.0, %v1456_v35  ;;  %v987_v35 = vld [vmem:[%s2028_s10] sm:$0x1]  ;;  %s1671_s10 = smov [#allocation15]  }
 0x50c   :  { %s1101_s21 = sshll.u32 %s1671_s10, 4  ;;  %s1102_s21 = int_to_ptr.vmem [resolvable:$true] %s1101_s21 }
 0x50d   :  { %1457 = vrcp.f32 %v619_v36  ;;  %s1619_s23 = scalar_lea.vmem %s1102_s21, 128  ;;  %p1624_p10 = scmp.lt.s32.totalorder %s1102_s21, %s1102_s21 }
 0x50e   :  { %p1620_p9 = scmp.ne.s32.totalorder %s1102_s21, %s1619_s23  ;;  %p1625_p11 = scmp.lt.s32.totalorder %s1619_s23, %s1619_s23 }
 0x510   :  { %p1626_p12 = por %p1625_p11, %p1624_p10 }
 0x512   :  { %p1627_p13 = pnand %p1626_p12, %p1620_p9 }
 0x517   :  { %v1458_v39 = vpop.eup %1457 }
 0x518   :  { %v622_v40 = vmul.f32 %v1458_v39, %v613_v38  ;;  %v629_v44 = vsub.f32 1.0, %v1458_v39  ;;  %v635_v46 = vmul.f32 %v1458_v39, %v438_v26  ;;  %v984_v26 = vld [vmem:[%s2027_s9 + $0x8] sm:$0xff] }
 0x51a   :  { %624 = vrot.lane.b32.xlu0 %v622_v40, %s1669_s29 }
 0x58c   :  { %v625_v41 = vpop.permute.xlu0 %624 }
 0x58d   :  { %v627_v42 = vadd.f32 %v625_v41, %v528_v30 }
 0x58f   :  { %1459 = vtanh.f32 %v627_v42 }
 0x599   :  { %v1460_v43 = vpop.eup %1459 }
 0x59a   :  { %631 = vrot.lane.b32.xlu1 %v1460_v43, %s1670_s12 }
 0x60c   :  { %v632_v45 = vpop.permute.xlu1 %631 }
 0x60d   :  { %v634_v48 = vmul.f32 %v632_v45, %v629_v44 }
 0x60f   :  { %v1953_v49 = vadd.f32 %v635_v46, %v634_v48 }
 0x611   :  { %v637_v50 = vmax.f32 %v1953_v49, 0.0 }
 0x613   :  { %639 = vrot.lane.b32.xlu0 %v637_v50, %s1670_s12 }
 0x685   :  { %v640_v51 = vpop.permute.xlu0 %639 }
 0x686   :  { %v642_v52 = vsel %vm156_vm5, %v640_v51, %v1910_v24 }
 0x687   :  { %1292 = vmatmul.mubr.msk.f32.vlgmr.msra.gmra.mrb[4].mxu1 %vm254_vm6, %v642_v52 }
 0x688   :  { %1420 = vmatpush3.bf16.msra.mxu1 %v1905_v22  ;;  %1332 = vmatprep.mubr.msk.f32.mxu1 %vm1667_vm0, %v1668_v1 }
 0x689   :  { %1421 = vmatprep.subr.bf16.mxu1 %v1666_v0 }
 0x68c   :  { %1423 = vmatpush3.bf16.msra.mxu1 %v1913_v25  ;;  %v983_v25 = vld [vmem:[%s2027_s9] sm:$0xff] }
 0x68d   :  { %1424 = vmatprep.subr.bf16.mxu1 %v1666_v0  ;;  %v1425_v13 = vpack.c.bf16 %v984_v26, %v983_v25 }
 0x75a   :  { %v712_v53 = vpop.f32.mrb[4].mxu1 }
 0x75b   :  { %v713_v55 = vadd.f32 %v1883_v47, %v712_v53  ;;  %v1293_v56 = vpop.f32.mrb[5].mxu1 }
 0x75d   :  { %v1133_v57 = vmul.f32 -1.442695, %v713_v55 }
 0x75f   :  { %1461 = vpow2.f32 %v1133_v57 }
 0x769   :  { %v1462_v58 = vpop.eup %1461 }
 0x76a   :  { %v791_v59 = vadd.f32 1.0, %v1462_v58 }
 0x76c   :  { %1463 = vrcp.f32 %v791_v59 }
 0x776   :  { %v1464_v61 = vpop.eup %1463 }
 0x777   :  { %v794_v62 = vmul.f32 %v1464_v61, %v785_v60  ;;  %v801_v47 = vsub.f32 1.0, %v1464_v61  ;;  %v807_v5 = vmul.f32 %v1464_v61, %v1910_v24 }
 0x779   :  { %796 = vrot.lane.b32.xlu1 %v794_v62, %s1669_s29 }
 0x7eb   :  { %v797_v63 = vpop.permute.xlu1 %796 }
 0x7ec   :  { %v799_v2 = vadd.f32 %v797_v63, %v713_v55 }
 0x7ee   :  { %1465 = vtanh.f32 %v799_v2 }
 0x7f8   :  { %v1466_v3 = vpop.eup %1465 }
 0x7f9   :  { %803 = vrot.lane.b32.xlu0 %v1466_v3, %s1670_s12 }
 0x7fd   :  { %888 = vrot.lane.b32.xlu0 %v1953_v49, %s1670_s12 }
 0x86b   :  { %v804_v4 = vpop.permute.xlu0 %803 }
 0x86c   :  { %v806_v6 = vmul.f32 %v804_v4, %v801_v47 }
 0x86e   :  { %v808_v7 = vadd.f32 %v807_v5, %v806_v6 }
 0x86f   :  { %v889_v54 = vpop.permute.xlu0 %888 }
 0x870   :  { %810 = vrot.lane.b32.xlu1 %v808_v7, %s1670_s12  ;;  %1333 = vmatmul.mubr.msk.f32.vlgmr.msra.gmra.mrb[6].mxu1 %vm156_vm5, %v889_v54 }
 0x871   :  { %1343 = vmatprep.mubr.msk.f32.mxu1 %vm1667_vm0, %v1668_v1  ;;  %1426 = vmatpush3.bf16.msra.mxu1 %v1425_v13 }
 0x872   :  { %1427 = vmatprep.subr.bf16.mxu1 %v1666_v0 }
 0x875   :  { %1429 = vmatpush3.bf16.msra.mxu1 %v1428_v18 }
 0x8e2   :  { %v811_v8 = vpop.permute.xlu1 %810 }
 0x8e3   :  { %v813_v9 = vsel %vm156_vm5, %v811_v8, %v1953_v49 }
 0x8e4   :  { %1322 = vmatmul.mubr.msk.f32.vlgmr.msra.gmra.mrb[8].mxu0 %vm254_vm6, %v813_v9 }
 0x943   :  { %v958_v10 = vpop.f32.mrb[6].mxu1 }
 0x944   :  { %v1334_v11 = vpop.f32.mrb[7].mxu1  ;;  %v959_v21 = vadd.f32 %v1948_v37, %v958_v10 }
 0x9b7   :  { %v883_v12 = vpop.f32.mrb[8].mxu0 }
 0x9b8   :  { %v884_v14 = vadd.f32 %v1945_v28, %v883_v12  ;;  %v1323_v16 = vpop.f32.mrb[9].mxu0 }
 0x9ba   :  { %v1136_v17 = vmul.f32 -1.442695, %v884_v14 }
 0x9bc   :  { %1467 = vpow2.f32 %v1136_v17 }
 0x9c6   :  { %v1468_v19 = vpop.eup %1467 }
 0x9c7   :  { %v965_v20 = vadd.f32 1.0, %v1468_v19 }
 0x9c9   :  { %1469 = vrcp.f32 %v965_v20 }
 0x9d3   :  { %v1470_v1 = vpop.eup %1469 }
 0x9d4   :  { %v968_v22 = vmul.f32 %v1470_v1, %v959_v21  ;;  %v975_v29 = vsub.f32 1.0, %v1470_v1  ;;  %v981_v31 = vmul.f32 %v1470_v1, %v1953_v49 }
 0x9d6   :  { %970 = vrot.lane.b32.xlu1 %v968_v22, %s1669_s29 }
 0xa48   :  { %v971_v23 = vpop.permute.xlu1 %970 }
 0xa49   :  { %v973_v24 = vadd.f32 %v971_v23, %v884_v14 }
 0xa4b   :  { %1471 = vtanh.f32 %v973_v24 }
 0xa55   :  { %v1472_v28 = vpop.eup %1471 }
 0xa56   :  { %977 = vrot.lane.b32.xlu0 %v1472_v28, %s1670_s12 }
 0xac8   :  { %v978_v30 = vpop.permute.xlu0 %977 }
 0xac9   :  { %v980_v32 = vmul.f32 %v978_v30, %v975_v29 }
 0xacb   :  { %v982_v33 = vadd.f32 %v981_v31, %v980_v32 }
 0xacd   :  { %989 = vrot.lane.b32.xlu1 %v982_v33, %s1670_s12  ;;  %v1078_v39 = vrot.slane %v982_v33, 6 }
 0xacf   :  { %v1081_v40 = vsel %vm1080_vm8, %v808_v7, %v1078_v39 }
 0xb3f   :  { %v990_v34 = vpop.permute.xlu1 %989 }
 0xb40   :  { %1344 = vmatmul.mubr.msk.f32.vlgmr.msra.gmra.mrb[8].mxu1 %vm156_vm5, %v990_v34 }
 0xc13   :  { %v1059_v0 = vpop.f32.mrb[8].mxu1 }
 0xc14   :  { %v1060_v36 = vadd.f32 %v1059_v0, %v987_v35  ;;  %v1345_v37 = vpop.f32.mrb[9].mxu1 }
 0xc16   :  { %v1064_v38 = vsel %vm1063_vm7, %v1060_v36, -inf }
 0xc17   :  { %1065 = vmax.xlane.f32.xlu0 %v1064_v38 }
 0xc2d   :  { %1083 = vrot.lane.b32.xlu0 %v1081_v40, %s1670_s12 }
 0xca4   :  { %v1066_v41 = vpop.xlane.xlu0 %1065 }
 0xca5   :  { %v1067_v42 = vsub.f32 %v1060_v36, %v1066_v41 }
 0xca7   :  { %v1068_v43 = vmul.f32 1.442695, %v1067_v42 }
 0xca8   :  { %v1084_v49 = vpop.permute.xlu0 %1083 }
 0xca9   :  { %1473 = vpow2.f32 %v1068_v43  ;;  %v1086_v51 = vsel %vm156_vm5, %v1084_v49, 0.0 }
 0xcaa   :  { %v1088_v55 = vrot.slane %v1086_v51, 7 }
 0xcb3   :  { %v1474_v44 = vpop.eup %1473 }
 0xcb4   :  { %v1070_v45 = vsel %vm1063_vm7, %v1474_v44, 0.0 }
 0xcb5   :  { %1071 = vadd.xlane.f32.xlu1 %v1070_v45 }
 0xd42   :  { %v1072_v46 = vpop.xlane.xlu1 %1071 }
 0xd43   :  { %1475 = vlog2.f32 %v1072_v46 }
 0xd4d   :  { %v1476_v48 = vpop.eup %1475 }
 0xd4e   :  { %v1074_v50 = vmul.f32 0.6931472, %v1476_v48 }
 0xd50   :  { %v1075_v52 = vadd.f32 %v1074_v50, %v1066_v41 }
 0xd52   :  { %v1076_v53 = vsub.f32 %v1060_v36, %v1075_v52 }
 0xd54   :  { %v1077_v56 = vsel %vm143_vm4, %v1076_v53, 0.0 }
 0xd55   :  { %v1091_v57 = vsel %vm1090_vm9, %v1077_v56, %v1088_v55 }
 0xd56   :  { %v1093_v58 = vsel %vm1092_vm10, %v1091_v57, 0.0 }
 0xd57   :  { %1094 = vst [vmem:[#allocation15] sm:$0xff] %v1093_v58 }
 0xd58   :  { %1630 = shalt.err (!%p1627_p13)
}
 0xd59   :  { %s1631_s18 = scalar_lea.hbm %s2029_s11, 128 }
 0xd5a   :  { %p1632_p0 = scmp.ne.s32.totalorder %s2029_s11, %s1631_s18  ;;  %p1635_p1 = scmp.lt.u32.totalorder %s1631_s18, %s2029_s11 }
 0xd5c   :  { %p1637_p2 = pnand %p1635_p1, %p1632_p0 }
 0xd5e   :  { %1640 = shalt.err (!%p1637_p2)
}
 0xd5f   :  { %1104 = dma.vmem_to_hbm [thread:$0]  %s1102_s21, 128, %s2029_s11, [#allocation6]  }
 0xd60   :  { %1651 = dma.done.wait [#allocation6], 128  }
 0xd61   :  { %1652 = vsyncadd [#allocation6], 4294967168 }
 0xd62   :  { %1108 = vsyncpa [#allocation5], 1 }
 0xd63   :  { %1109 = vsyncpa [#allocation8], 1 }
 0xd64   :  { %1110 = vsyncpa [#allocation11], 1 }
 0xd65   :  { %1111 = vsyncpa [#allocation14], 1 }
 0xd66   :  { %1112 = vsyncpa [#allocation6], 1 }

</bundles_post_ra>
